<compile_context>
chip_gen: v7x
topology: tpu7x:2x2x1
jax: 0.10.0
libtpu: 0.0.40
codegen_flags: <defaults>
</compile_context>

<pallas_src>
import functools

import jax
import jax.numpy as jnp
from jax.experimental import pallas as pl
from jax.experimental.pallas import tpu as pltpu

HIDDEN = (512, 256, 128, 32)
BN_EPS = 1e-5
LANE = 128


def _round_up(n, m):
    return ((n + m - 1) // m) * m


def _extractor_kernel(*refs, use_dropout):
    if use_dropout:
        (x_ref,
         w1, g1, b1, w2, g2, b2, w3, g3, b3, w4, g4, b4,
         m1, m2, m3,
         o_ref) = refs
    else:
        (x_ref,
         w1, g1, b1, w2, g2, b2, w3, g3, b3, w4, g4, b4,
         o_ref) = refs
        m1 = m2 = m3 = None

    inv_b = 1.0 / x_ref.shape[0]

    def layer(h, w_ref, g_ref, beta_ref):
        # Linear (bias omitted: exactly cancelled by the batch-stat BN below).
        # bf16 operands -> native MXU path; f32 accumulation.
        z = jnp.dot(h.astype(jnp.bfloat16), w_ref[...],
                    preferred_element_type=jnp.float32)
        # BatchNorm1d, training mode: one-pass biased batch statistics over axis 0.
        s1 = jnp.sum(z, axis=0, keepdims=True)
        s2 = jnp.sum(z * z, axis=0, keepdims=True)
        mean = s1 * inv_b
        var = jnp.maximum(s2 * inv_b - mean * mean, 0.0)
        # Fold BN into a single per-feature affine (work on (1, N), apply once to (B, N)).
        scale = g_ref[...] * jax.lax.rsqrt(var + BN_EPS)
        shift = beta_ref[...] - mean * scale
        # ReLU
        return jnp.maximum(z * scale + shift, 0.0)

    h = x_ref[...].astype(jnp.float32)
    h = layer(h, w1, g1, b1)
    if use_dropout:
        h = h * m1[...]          # mask already scaled by 1/(1-p)
    h = layer(h, w2, g2, b2)
    if use_dropout:
        h = h * m2[...]
    h = layer(h, w3, g3, b3)
    if use_dropout:
        h = h * m3[...]
    h = layer(h, w4, g4, b4)     # dropout4 exists in the module but is unused in forward
    o_ref[...] = h.astype(o_ref.dtype)
    # TODO(synk): BatchNorm running_mean/running_var are not tracked (training-mode
    # batch statistics only), matching this forward pass but not eval-mode parity.


@functools.partial(jax.jit, static_argnames=("dropout_rate",))
def extractor_forward(x, params, key, *, dropout_rate=0.0):
    """x: (B, input_dim) f32.  params: 12 arrays (W bf16, gamma f32, beta f32) x 4.
    key: jax.random key used only when dropout_rate > 0."""
    B, d_in = x.shape
    d_pad = params[0].shape[0]          # W1 is stored with zero-padded input rows
    if d_pad != d_in:
        x = jnp.pad(x, ((0, 0), (0, d_pad - d_in)))

    use_dropout = float(dropout_rate) > 0.0
    masks = []
    if use_dropout:
        keep = 1.0 - float(dropout_rate)
        for k, n in zip(jax.random.split(key, 3), HIDDEN[:3]):
            m = jax.random.bernoulli(k, keep, (B, n)).astype(jnp.float32) * (1.0 / keep)
            masks.append(m)

    kernel = functools.partial(_extractor_kernel, use_dropout=use_dropout)
    vmem_spec = pl.BlockSpec(memory_space=pltpu.MemorySpace.VMEM)
    n_inputs = 1 + len(params) + len(masks)
    return pl.pallas_call(
        kernel,
        out_shape=jax.ShapeDtypeStruct((B, HIDDEN[-1]), jnp.float32),
        in_specs=[vmem_spec] * n_inputs,
        out_specs=vmem_spec,
        compiler_params=pltpu.CompilerParams(vmem_limit_bytes=32 << 20),
    )(x, *params, *masks)


def init_params(key, input_dim):
    """Matches the module's _init_weights: xavier_normal_(gain=1.0) on Linear weights
    (bias is zero-init and dropped -- cancelled by batch-stat BN); BN gamma=1, beta=0.
    Weights are shipped as bf16 with the input dim zero-padded to a 128-lane multiple."""
    in_dims = (input_dim,) + HIDDEN[:-1]
    in_dims_padded = (_round_up(input_dim, LANE),) + HIDDEN[:-1]
    params = []
    for i in range(4):
        fan_in, fan_out = in_dims[i], HIDDEN[i]
        key, sub = jax.random.split(key)
        std = (2.0 / (fan_in + fan_out)) ** 0.5
        w = std * jax.random.normal(sub, (fan_in, fan_out), dtype=jnp.float32)
        if in_dims_padded[i] != fan_in:
            w = jnp.pad(w, ((0, in_dims_padded[i] - fan_in), (0, 0)))
        params.append(w.astype(jnp.bfloat16))                     # Linear weight
        params.append(jnp.ones((1, fan_out), dtype=jnp.float32))   # BN gamma
        params.append(jnp.zeros((1, fan_out), dtype=jnp.float32))  # BN beta
    return tuple(params)


def _reference_forward(x, params):
    """Pure-JAX reference (torch semantics, dropout off), same bf16 matmul operands."""
    d_pad = params[0].shape[0]
    h = jnp.pad(x, ((0, 0), (0, d_pad - x.shape[1]))).astype(jnp.float32)
    for i in range(4):
        w, g, be = params[3 * i: 3 * i + 3]
        z = jnp.dot(h.astype(jnp.bfloat16), w, preferred_element_type=jnp.float32)
        mean = jnp.mean(z, axis=0, keepdims=True)
        var = jnp.mean((z - mean) ** 2, axis=0, keepdims=True)   # biased, like torch BN
        h = jnp.maximum((z - mean) / jnp.sqrt(var + BN_EPS) * g + be, 0.0)
    return h


if __name__ == "__main__":
    key = jax.random.PRNGKey(0)
    B, INPUT_DIM = 16, 64   # small batch; BatchNorm1d training mode needs B > 1

    k_x, k_p, k_d = jax.random.split(key, 3)
    x = jax.random.normal(k_x, (B, INPUT_DIM), dtype=jnp.float32)
    params = init_params(k_p, INPUT_DIM)

    # Deterministic path (dropout disabled) -> compare against the pure-JAX reference.
    out = extractor_forward(x, params, k_d, dropout_rate=0.0)
    out = jax.block_until_ready(out)
    ref = _reference_forward(x, params)
    assert out.shape == (B, HIDDEN[-1])
    assert jnp.allclose(out, ref, atol=1e-2, rtol=1e-2)

    # Training-mode dropout path (masks generated in the wrapper): sanity checks only.
    out_d = extractor_forward(x, params, k_d, dropout_rate=0.1)
    out_d = jax.block_until_ready(out_d)
    assert out_d.shape == (B, HIDDEN[-1])
    assert bool(jnp.all(jnp.isfinite(out_d)))
    assert bool(jnp.all(out_d >= 0.0))   # ReLU output, dropout only zeros/scales

    print("KERNEL_OK")
</pallas_src>

<mosaic_0001>
module attributes {stable_mosaic.version = 11 : i64} {
  func.func @_extractor_kernel(%arg0: memref<16x128xf32, #tpu.memory_space<vmem>>, %arg1: memref<128x512xbf16, #tpu.memory_space<vmem>>, %arg2: memref<1x512xf32, #tpu.memory_space<vmem>>, %arg3: memref<1x512xf32, #tpu.memory_space<vmem>>, %arg4: memref<512x256xbf16, #tpu.memory_space<vmem>>, %arg5: memref<1x256xf32, #tpu.memory_space<vmem>>, %arg6: memref<1x256xf32, #tpu.memory_space<vmem>>, %arg7: memref<256x128xbf16, #tpu.memory_space<vmem>>, %arg8: memref<1x128xf32, #tpu.memory_space<vmem>>, %arg9: memref<1x128xf32, #tpu.memory_space<vmem>>, %arg10: memref<128x32xbf16, #tpu.memory_space<vmem>>, %arg11: memref<1x32xf32, #tpu.memory_space<vmem>>, %arg12: memref<1x32xf32, #tpu.memory_space<vmem>>, %arg13: memref<16x32xf32, #tpu.memory_space<vmem>>) attributes {dimension_semantics = [], scalar_prefetch = 0 : i64, scratch_operands = 0 : i64, tpu.core_type = #tpu.core_type<tc>} {
    %c0 = arith.constant 0 : index
    %c0_0 = arith.constant 0 : index
    %0 = vector.load %arg0[%c0, %c0_0] : memref<16x128xf32, #tpu.memory_space<vmem>>, vector<16x128xf32>
    %1 = arith.truncf %0 : vector<16x128xf32> to vector<16x128xbf16>
    %c0_1 = arith.constant 0 : index
    %c0_2 = arith.constant 0 : index
    %2 = vector.load %arg1[%c0_1, %c0_2] : memref<128x512xbf16, #tpu.memory_space<vmem>>, vector<128x512xbf16>
    %cst = arith.constant dense<0.000000e+00> : vector<16x512xf32>
    %3 = tpu.matmul %1, %2, %cst {dimension_numbers = #tpu.dot_dimension_numbers<[1], [0], [0], [1], [0, 0, 1, 1], [], []>} : vector<16x128xbf16>, vector<128x512xbf16>, vector<16x512xf32> -> vector<16x512xf32>
    %cst_3 = arith.constant dense<0.000000e+00> : vector<512xf32>
    %4 = vector.multi_reduction <add>, %3, %cst_3 [0] : vector<16x512xf32> to vector<512xf32>
    %5 = vector.shape_cast %4 : vector<512xf32> to vector<1x512xf32>
    %6 = arith.mulf %3, %3 : vector<16x512xf32>
    %cst_4 = arith.constant dense<0.000000e+00> : vector<512xf32>
    %7 = vector.multi_reduction <add>, %6, %cst_4 [0] : vector<16x512xf32> to vector<512xf32>
    %8 = vector.shape_cast %7 : vector<512xf32> to vector<1x512xf32>
    %cst_5 = arith.constant 6.250000e-02 : f32
    %9 = vector.broadcast %cst_5 : f32 to vector<1x512xf32>
    %10 = arith.mulf %5, %9 : vector<1x512xf32>
    %cst_6 = arith.constant 6.250000e-02 : f32
    %11 = vector.broadcast %cst_6 : f32 to vector<1x512xf32>
    %12 = arith.mulf %8, %11 : vector<1x512xf32>
    %13 = arith.mulf %10, %10 : vector<1x512xf32>
    %14 = arith.subf %12, %13 : vector<1x512xf32>
    %cst_7 = arith.constant 0.000000e+00 : f32
    %15 = vector.broadcast %cst_7 : f32 to vector<1x512xf32>
    %16 = arith.maximumf %14, %15 : vector<1x512xf32>
    %c0_8 = arith.constant 0 : index
    %c0_9 = arith.constant 0 : index
    %17 = vector.load %arg2[%c0_8, %c0_9] : memref<1x512xf32, #tpu.memory_space<vmem>>, vector<1x512xf32>
    %cst_10 = arith.constant 9.99999974E-6 : f32
    %18 = vector.broadcast %cst_10 : f32 to vector<1x512xf32>
    %19 = arith.addf %16, %18 : vector<1x512xf32>
    %20 = math.rsqrt %19 : vector<1x512xf32>
    %21 = arith.mulf %17, %20 : vector<1x512xf32>
    %c0_11 = arith.constant 0 : index
    %c0_12 = arith.constant 0 : index
    %22 = vector.load %arg3[%c0_11, %c0_12] : memref<1x512xf32, #tpu.memory_space<vmem>>, vector<1x512xf32>
    %23 = arith.mulf %10, %21 : vector<1x512xf32>
    %24 = arith.subf %22, %23 : vector<1x512xf32>
    %25 = vector.broadcast %21 : vector<1x512xf32> to vector<16x512xf32>
    %26 = arith.mulf %3, %25 : vector<16x512xf32>
    %27 = vector.broadcast %24 : vector<1x512xf32> to vector<16x512xf32>
    %28 = arith.addf %26, %27 : vector<16x512xf32>
    %cst_13 = arith.constant 0.000000e+00 : f32
    %29 = vector.broadcast %cst_13 : f32 to vector<16x512xf32>
    %30 = arith.maximumf %28, %29 : vector<16x512xf32>
    %31 = arith.truncf %30 : vector<16x512xf32> to vector<16x512xbf16>
    %c0_14 = arith.constant 0 : index
    %c0_15 = arith.constant 0 : index
    %32 = vector.load %arg4[%c0_14, %c0_15] : memref<512x256xbf16, #tpu.memory_space<vmem>>, vector<512x256xbf16>
    %cst_16 = arith.constant dense<0.000000e+00> : vector<16x256xf32>
    %33 = tpu.matmul %31, %32, %cst_16 {dimension_numbers = #tpu.dot_dimension_numbers<[1], [0], [0], [1], [0, 0, 1, 1], [], []>} : vector<16x512xbf16>, vector<512x256xbf16>, vector<16x256xf32> -> vector<16x256xf32>
    %cst_17 = arith.constant dense<0.000000e+00> : vector<256xf32>
    %34 = vector.multi_reduction <add>, %33, %cst_17 [0] : vector<16x256xf32> to vector<256xf32>
    %35 = vector.shape_cast %34 : vector<256xf32> to vector<1x256xf32>
    %36 = arith.mulf %33, %33 : vector<16x256xf32>
    %cst_18 = arith.constant dense<0.000000e+00> : vector<256xf32>
    %37 = vector.multi_reduction <add>, %36, %cst_18 [0] : vector<16x256xf32> to vector<256xf32>
    %38 = vector.shape_cast %37 : vector<256xf32> to vector<1x256xf32>
    %cst_19 = arith.constant 6.250000e-02 : f32
    %39 = vector.broadcast %cst_19 : f32 to vector<1x256xf32>
    %40 = arith.mulf %35, %39 : vector<1x256xf32>
    %cst_20 = arith.constant 6.250000e-02 : f32
    %41 = vector.broadcast %cst_20 : f32 to vector<1x256xf32>
    %42 = arith.mulf %38, %41 : vector<1x256xf32>
    %43 = arith.mulf %40, %40 : vector<1x256xf32>
    %44 = arith.subf %42, %43 : vector<1x256xf32>
    %cst_21 = arith.constant 0.000000e+00 : f32
    %45 = vector.broadcast %cst_21 : f32 to vector<1x256xf32>
    %46 = arith.maximumf %44, %45 : vector<1x256xf32>
    %c0_22 = arith.constant 0 : index
    %c0_23 = arith.constant 0 : index
    %47 = vector.load %arg5[%c0_22, %c0_23] : memref<1x256xf32, #tpu.memory_space<vmem>>, vector<1x256xf32>
    %cst_24 = arith.constant 9.99999974E-6 : f32
    %48 = vector.broadcast %cst_24 : f32 to vector<1x256xf32>
    %49 = arith.addf %46, %48 : vector<1x256xf32>
    %50 = math.rsqrt %49 : vector<1x256xf32>
    %51 = arith.mulf %47, %50 : vector<1x256xf32>
    %c0_25 = arith.constant 0 : index
    %c0_26 = arith.constant 0 : index
    %52 = vector.load %arg6[%c0_25, %c0_26] : memref<1x256xf32, #tpu.memory_space<vmem>>, vector<1x256xf32>
    %53 = arith.mulf %40, %51 : vector<1x256xf32>
    %54 = arith.subf %52, %53 : vector<1x256xf32>
    %55 = vector.broadcast %51 : vector<1x256xf32> to vector<16x256xf32>
    %56 = arith.mulf %33, %55 : vector<16x256xf32>
    %57 = vector.broadcast %54 : vector<1x256xf32> to vector<16x256xf32>
    %58 = arith.addf %56, %57 : vector<16x256xf32>
    %cst_27 = arith.constant 0.000000e+00 : f32
    %59 = vector.broadcast %cst_27 : f32 to vector<16x256xf32>
    %60 = arith.maximumf %58, %59 : vector<16x256xf32>
    %61 = arith.truncf %60 : vector<16x256xf32> to vector<16x256xbf16>
    %c0_28 = arith.constant 0 : index
    %c0_29 = arith.constant 0 : index
    %62 = vector.load %arg7[%c0_28, %c0_29] : memref<256x128xbf16, #tpu.memory_space<vmem>>, vector<256x128xbf16>
    %cst_30 = arith.constant dense<0.000000e+00> : vector<16x128xf32>
    %63 = tpu.matmul %61, %62, %cst_30 {dimension_numbers = #tpu.dot_dimension_numbers<[1], [0], [0], [1], [0, 0, 1, 1], [], []>} : vector<16x256xbf16>, vector<256x128xbf16>, vector<16x128xf32> -> vector<16x128xf32>
    %cst_31 = arith.constant dense<0.000000e+00> : vector<128xf32>
    %64 = vector.multi_reduction <add>, %63, %cst_31 [0] : vector<16x128xf32> to vector<128xf32>
    %65 = vector.shape_cast %64 : vector<128xf32> to vector<1x128xf32>
    %66 = arith.mulf %63, %63 : vector<16x128xf32>
    %cst_32 = arith.constant dense<0.000000e+00> : vector<128xf32>
    %67 = vector.multi_reduction <add>, %66, %cst_32 [0] : vector<16x128xf32> to vector<128xf32>
    %68 = vector.shape_cast %67 : vector<128xf32> to vector<1x128xf32>
    %cst_33 = arith.constant 6.250000e-02 : f32
    %69 = vector.broadcast %cst_33 : f32 to vector<1x128xf32>
    %70 = arith.mulf %65, %69 : vector<1x128xf32>
    %cst_34 = arith.constant 6.250000e-02 : f32
    %71 = vector.broadcast %cst_34 : f32 to vector<1x128xf32>
    %72 = arith.mulf %68, %71 : vector<1x128xf32>
    %73 = arith.mulf %70, %70 : vector<1x128xf32>
    %74 = arith.subf %72, %73 : vector<1x128xf32>
    %cst_35 = arith.constant 0.000000e+00 : f32
    %75 = vector.broadcast %cst_35 : f32 to vector<1x128xf32>
    %76 = arith.maximumf %74, %75 : vector<1x128xf32>
    %c0_36 = arith.constant 0 : index
    %c0_37 = arith.constant 0 : index
    %77 = vector.load %arg8[%c0_36, %c0_37] : memref<1x128xf32, #tpu.memory_space<vmem>>, vector<1x128xf32>
    %cst_38 = arith.constant 9.99999974E-6 : f32
    %78 = vector.broadcast %cst_38 : f32 to vector<1x128xf32>
    %79 = arith.addf %76, %78 : vector<1x128xf32>
    %80 = math.rsqrt %79 : vector<1x128xf32>
    %81 = arith.mulf %77, %80 : vector<1x128xf32>
    %c0_39 = arith.constant 0 : index
    %c0_40 = arith.constant 0 : index
    %82 = vector.load %arg9[%c0_39, %c0_40] : memref<1x128xf32, #tpu.memory_space<vmem>>, vector<1x128xf32>
    %83 = arith.mulf %70, %81 : vector<1x128xf32>
    %84 = arith.subf %82, %83 : vector<1x128xf32>
    %85 = vector.broadcast %81 : vector<1x128xf32> to vector<16x128xf32>
    %86 = arith.mulf %63, %85 : vector<16x128xf32>
    %87 = vector.broadcast %84 : vector<1x128xf32> to vector<16x128xf32>
    %88 = arith.addf %86, %87 : vector<16x128xf32>
    %cst_41 = arith.constant 0.000000e+00 : f32
    %89 = vector.broadcast %cst_41 : f32 to vector<16x128xf32>
    %90 = arith.maximumf %88, %89 : vector<16x128xf32>
    %91 = arith.truncf %90 : vector<16x128xf32> to vector<16x128xbf16>
    %c0_42 = arith.constant 0 : index
    %c0_43 = arith.constant 0 : index
    %92 = vector.load %arg10[%c0_42, %c0_43] : memref<128x32xbf16, #tpu.memory_space<vmem>>, vector<128x32xbf16>
    %cst_44 = arith.constant dense<0.000000e+00> : vector<16x32xf32>
    %93 = tpu.matmul %91, %92, %cst_44 {dimension_numbers = #tpu.dot_dimension_numbers<[1], [0], [0], [1], [0, 0, 1, 1], [], []>} : vector<16x128xbf16>, vector<128x32xbf16>, vector<16x32xf32> -> vector<16x32xf32>
    %cst_45 = arith.constant dense<0.000000e+00> : vector<32xf32>
    %94 = vector.multi_reduction <add>, %93, %cst_45 [0] : vector<16x32xf32> to vector<32xf32>
    %95 = vector.shape_cast %94 : vector<32xf32> to vector<1x32xf32>
    %96 = arith.mulf %93, %93 : vector<16x32xf32>
    %cst_46 = arith.constant dense<0.000000e+00> : vector<32xf32>
    %97 = vector.multi_reduction <add>, %96, %cst_46 [0] : vector<16x32xf32> to vector<32xf32>
    %98 = vector.shape_cast %97 : vector<32xf32> to vector<1x32xf32>
    %cst_47 = arith.constant 6.250000e-02 : f32
    %99 = vector.broadcast %cst_47 : f32 to vector<1x32xf32>
    %100 = arith.mulf %95, %99 : vector<1x32xf32>
    %cst_48 = arith.constant 6.250000e-02 : f32
    %101 = vector.broadcast %cst_48 : f32 to vector<1x32xf32>
    %102 = arith.mulf %98, %101 : vector<1x32xf32>
    %103 = arith.mulf %100, %100 : vector<1x32xf32>
    %104 = arith.subf %102, %103 : vector<1x32xf32>
    %cst_49 = arith.constant 0.000000e+00 : f32
    %105 = vector.broadcast %cst_49 : f32 to vector<1x32xf32>
    %106 = arith.maximumf %104, %105 : vector<1x32xf32>
    %c0_50 = arith.constant 0 : index
    %c0_51 = arith.constant 0 : index
    %107 = vector.load %arg11[%c0_50, %c0_51] : memref<1x32xf32, #tpu.memory_space<vmem>>, vector<1x32xf32>
    %cst_52 = arith.constant 9.99999974E-6 : f32
    %108 = vector.broadcast %cst_52 : f32 to vector<1x32xf32>
    %109 = arith.addf %106, %108 : vector<1x32xf32>
    %110 = math.rsqrt %109 : vector<1x32xf32>
    %111 = arith.mulf %107, %110 : vector<1x32xf32>
    %c0_53 = arith.constant 0 : index
    %c0_54 = arith.constant 0 : index
    %112 = vector.load %arg12[%c0_53, %c0_54] : memref<1x32xf32, #tpu.memory_space<vmem>>, vector<1x32xf32>
    %113 = arith.mulf %100, %111 : vector<1x32xf32>
    %114 = arith.subf %112, %113 : vector<1x32xf32>
    %115 = vector.broadcast %111 : vector<1x32xf32> to vector<16x32xf32>
    %116 = arith.mulf %93, %115 : vector<16x32xf32>
    %117 = vector.broadcast %114 : vector<1x32xf32> to vector<16x32xf32>
    %118 = arith.addf %116, %117 : vector<16x32xf32>
    %cst_55 = arith.constant 0.000000e+00 : f32
    %119 = vector.broadcast %cst_55 : f32 to vector<16x32xf32>
    %120 = arith.maximumf %118, %119 : vector<16x32xf32>
    %c0_56 = arith.constant 0 : index
    %c0_57 = arith.constant 0 : index
    %121 = vector.load %arg13[%c0_56, %c0_57] : memref<16x32xf32, #tpu.memory_space<vmem>>, vector<16x32xf32>
    tpu.vector_store %arg13[%c0_56, %c0_57], %120 {strides = array<i32>} : memref<16x32xf32, #tpu.memory_space<vmem>>, vector<16x32xf32>,
    return
  }
}

</mosaic_0001>

<bundles_post_ra>
// kernel: extractor_forward.1
= control target key start
LH: loop header
LB: loop body
LE: loop exit
PB: predicated region body
PF: predicated region fallthrough
CT: control target
= control target key end

     0   :  { %18 = vsyncpa [#allocation3], 0  ;;  %s2528_s0 = inlined_call_operand.vmem [shape: f32[16,128], index: 0, kind: input, shape index: {}]   ;;  %s2529_s1 = inlined_call_operand.hbm [shape: bf16[128,512], index: 1, kind: input, shape index: {}]   ;;  %s2530_s2 = inlined_call_operand.hbm [shape: f32[1,512], index: 2, kind: input, shape index: {}]   ;;  %s2531_s3 = inlined_call_operand.hbm [shape: f32[1,512], index: 3, kind: input, shape index: {}]   ;;  %s2532_s4 = inlined_call_operand.hbm [shape: bf16[512,256], index: 4, kind: input, shape index: {}]   ;;  %s2533_s5 = inlined_call_operand.vmem [shape: f32[1,256], index: 5, kind: input, shape index: {}]   ;;  %s2534_s6 = inlined_call_operand.hbm [shape: f32[1,256], index: 6, kind: input, shape index: {}]   ;;  %s2535_s7 = inlined_call_operand.vmem [shape: bf16[256,128], index: 7, kind: input, shape index: {}]   ;;  %s2536_s8 = inlined_call_operand.vmem [shape: f32[1,128], index: 8, kind: input, shape index: {}]   ;;  %s2537_s9 = inlined_call_operand.hbm [shape: f32[1,128], index: 9, kind: input, shape index: {}]   ;;  %s2538_s10 = inlined_call_operand.vmem [shape: bf16[128,32], index: 10, kind: input, shape index: {}]   ;;  %s2539_s11 = inlined_call_operand.vmem [shape: f32[1,32], index: 11, kind: input, shape index: {}]   ;;  %s2540_s12 = inlined_call_operand.vmem [shape: f32[1,32], index: 12, kind: input, shape index: {}]   ;;  %s2541_s13 = inlined_call_operand.hbm [shape: f32[16,32], index: 13, kind: output, shape index: {}]  }
   0x1   :  { %19 = vsyncpa [#allocation6], 0 }
   0x2   :  { %20 = vsyncpa [#allocation9], 0 }
   0x3   :  { %21 = vsyncpa [#allocation12], 0 }
   0x4   :  { %22 = vsyncpa [#allocation4], 0  ;;  %s2155_s25 = smov [#allocation5]   ;;  %s2156_s27 = smov [#allocation8]  }
   0x5   :  { %s43_s26 = sshll.u32 %s2155_s25, 4  ;;  %s62_s28 = sshll.u32 %s2156_s27, 4  ;;  %s44_s26 = int_to_ptr.vmem [resolvable:$true] %s43_s26  ;;  %s2240_s28 = int_to_ptr.vmem [resolvable:$true] %s62_s28 }
   0x6   :  { %s1991_s14 = scalar_lea.hbm %s2530_s2, 64 }
   0x7   :  { %p1992_p0 = scmp.ne.s32.totalorder %s2530_s2, %s1991_s14  ;;  %p1995_p1 = scmp.lt.u32.totalorder %s1991_s14, %s2530_s2 }
   0x9   :  { %p1997_p2 = pnand %p1995_p1, %p1992_p0 }
   0xb   :  { %2000 = shalt.err (!%p1997_p2)
}
   0xc   :  { %s2001_s19 = scalar_lea.vmem %s44_s26, 64  ;;  %p2006_p4 = scmp.lt.s32.totalorder %s44_s26, %s44_s26 }
   0xd   :  { %p2002_p3 = scmp.ne.s32.totalorder %s44_s26, %s2001_s19  ;;  %p2007_p5 = scmp.lt.s32.totalorder %s2001_s19, %s2001_s19 }
   0xf   :  { %p2008_p6 = por %p2007_p5, %p2006_p4 }
  0x11   :  { %p2009_p7 = pnand %p2008_p6, %p2002_p3 }
  0x13   :  { %2012 = shalt.err (!%p2009_p7)
}
  0x14   :  { %46 = dma.hbm_to_vmem [thread:$0]  %s2530_s2, 64, %s44_s26, [#allocation6]  }
  0x15   :  { %s2013_s24 = scalar_lea.hbm %s2532_s4, 8192 }
  0x16   :  { %p2014_p8 = scmp.ne.s32.totalorder %s2532_s4, %s2013_s24  ;;  %p2017_p9 = scmp.lt.u32.totalorder %s2013_s24, %s2532_s4 }
  0x18   :  { %p2019_p10 = pnand %p2017_p9, %p2014_p8 }
  0x1a   :  { %2022 = shalt.err (!%p2019_p10)
}
  0x1b   :  { %s2023_s14 = scalar_lea.vmem %s2240_s28, 8192  ;;  %p2028_p12 = scmp.lt.s32.totalorder %s2240_s28, %s2240_s28 }
  0x1c   :  { %p2024_p11 = scmp.ne.s32.totalorder %s2240_s28, %s2023_s14  ;;  %p2029_p13 = scmp.lt.s32.totalorder %s2023_s14, %s2023_s14 }
  0x1e   :  { %p2030_p0 = por %p2029_p13, %p2028_p12 }
  0x20   :  { %p2031_p1 = pnand %p2030_p0, %p2024_p11 }
  0x22   :  { %2034 = shalt.err (!%p2031_p1)
}
  0x23   :  { %s2157_s2 = smov 128   ;;  %s2158_s26 = smov 8  }
  0x24   :  { %68 = dma.hbm_to_vmem [thread:$0]  %s2532_s4, 8192, %s2240_s28, [#allocation9], %s2157_s2, %s2157_s2, %s2158_s26  }
  0x25   :  { %s2159_s17 = smov [#allocation2]   ;;  %s2035_s21 = scalar_lea.hbm %s2529_s1, 4096 }
  0x26   :  { %s30_s18 = sshll.u32 %s2159_s17, 4  ;;  %p2036_p2 = scmp.ne.s32.totalorder %s2529_s1, %s2035_s21  ;;  %s31_s18 = int_to_ptr.vmem [resolvable:$true] %s30_s18 }
  0x27   :  { %p2039_p3 = scmp.lt.u32.totalorder %s2035_s21, %s2529_s1 }
  0x29   :  { %p2041_p4 = pnand %p2039_p3, %p2036_p2 }
  0x2b   :  { %2044 = shalt.err (!%p2041_p4)
}
  0x2c   :  { %s2045_s27 = scalar_lea.vmem %s31_s18, 4096  ;;  %p2050_p6 = scmp.lt.s32.totalorder %s31_s18, %s31_s18 }
  0x2d   :  { %p2046_p5 = scmp.ne.s32.totalorder %s31_s18, %s2045_s27  ;;  %p2051_p7 = scmp.lt.s32.totalorder %s2045_s27, %s2045_s27 }
  0x2f   :  { %p2052_p8 = por %p2051_p7, %p2050_p6 }
  0x31   :  { %p2053_p9 = pnand %p2052_p8, %p2046_p5 }
  0x33   :  { %2056 = shalt.err (!%p2053_p9)
}
  0x34   :  { %s2160_s4 = smov 256   ;;  %s2161_s28 = smov 16  }
  0x35   :  { %36 = dma.hbm_to_vmem [thread:$0]  %s2529_s1, 4096, %s31_s18, [#allocation3], %s2160_s4, %s2160_s4, %s2161_s28  }
  0x36   :  { %s2162_s14 = smov [#allocation7]   ;;  %s2163_s16 = smov [#allocation10]  }
  0x37   :  { %s53_s15 = sshll.u32 %s2162_s14, 4  ;;  %s77_s17 = sshll.u32 %s2163_s16, 4  ;;  %s54_s15 = int_to_ptr.vmem [resolvable:$true] %s53_s15  ;;  %s78_s17 = int_to_ptr.vmem [resolvable:$true] %s77_s17 }
  0x38   :  { %s2057_s21 = scalar_lea.hbm %s2531_s3, 64 }
  0x39   :  { %p2058_p10 = scmp.ne.s32.totalorder %s2531_s3, %s2057_s21  ;;  %p2061_p11 = scmp.lt.u32.totalorder %s2057_s21, %s2531_s3 }
  0x3b   :  { %p2063_p12 = pnand %p2061_p11, %p2058_p10 }
  0x3d   :  { %2066 = shalt.err (!%p2063_p12)
}
  0x3e   :  { %s2067_s1 = scalar_lea.vmem %s54_s15, 64  ;;  %p2072_p0 = scmp.lt.s32.totalorder %s54_s15, %s54_s15 }
  0x3f   :  { %p2068_p13 = scmp.ne.s32.totalorder %s54_s15, %s2067_s1  ;;  %p2073_p1 = scmp.lt.s32.totalorder %s2067_s1, %s2067_s1 }
  0x41   :  { %p2074_p2 = por %p2073_p1, %p2072_p0 }
  0x43   :  { %p2075_p3 = pnand %p2074_p2, %p2068_p13 }
  0x45   :  { %2078 = shalt.err (!%p2075_p3)
}
  0x46   :  { %56 = dma.hbm_to_vmem [thread:$0]  %s2531_s3, 64, %s54_s15, [#allocation6]  }
  0x47   :  { %s2079_s29 = scalar_lea.hbm %s2534_s6, 32 }
  0x48   :  { %p2080_p4 = scmp.ne.s32.totalorder %s2534_s6, %s2079_s29  ;;  %p2083_p5 = scmp.lt.u32.totalorder %s2079_s29, %s2534_s6 }
  0x4a   :  { %p2085_p6 = pnand %p2083_p5, %p2080_p4 }
  0x4c   :  { %2088 = shalt.err (!%p2085_p6)
}
  0x4d   :  { %s2089_s20 = scalar_lea.vmem %s78_s17, 32  ;;  %p2094_p8 = scmp.lt.s32.totalorder %s78_s17, %s78_s17 }
  0x4e   :  { %p2090_p7 = scmp.ne.s32.totalorder %s78_s17, %s2089_s20  ;;  %p2095_p9 = scmp.lt.s32.totalorder %s2089_s20, %s2089_s20 }
  0x50   :  { %p2096_p10 = por %p2095_p9, %p2094_p8 }
  0x52   :  { %p2097_p11 = pnand %p2096_p10, %p2090_p7 }
  0x54   :  { %2100 = shalt.err (!%p2097_p11)
}
  0x55   :  { %80 = dma.hbm_to_vmem [thread:$0]  %s2534_s6, 32, %s78_s17, [#allocation9]  }
  0x56   :  { %s2164_s21 = smov [#allocation11]   ;;  %s2101_s25 = scalar_lea.hbm %s2537_s9, 16 }
  0x57   :  { %s91_s22 = sshll.u32 %s2164_s21, 4  ;;  %p2102_p12 = scmp.ne.s32.totalorder %s2537_s9, %s2101_s25  ;;  %s92_s22 = int_to_ptr.vmem [resolvable:$true] %s91_s22 }
  0x58   :  { %p2105_p13 = scmp.lt.u32.totalorder %s2101_s25, %s2537_s9 }
  0x5a   :  { %p2107_p0 = pnand %p2105_p13, %p2102_p12 }
  0x5c   :  { %2110 = shalt.err (!%p2107_p0)
}
  0x5d   :  { %s2111_s28 = scalar_lea.vmem %s92_s22, 16  ;;  %s2115_s6 = scalar_lea.vmem %s92_s22, 32 }
  0x5e   :  { %p2112_p1 = scmp.ne.s32.totalorder %s92_s22, %s2111_s28  ;;  %p2116_p2 = scmp.lt.s32.totalorder %s92_s22, %s92_s22 }
  0x5f   :  { %p2117_p3 = scmp.lt.s32.totalorder %s2115_s6, %s2111_s28 }
  0x61   :  { %p2118_p4 = por %p2117_p3, %p2116_p2 }
  0x63   :  { %p2119_p5 = pnand %p2118_p4, %p2112_p1 }
  0x65   :  { %2122 = shalt.err (!%p2119_p5)
}
  0x66   :  { %94 = dma.hbm_to_vmem [thread:$0]  %s2537_s9, 16, %s92_s22, [#allocation12]  }
  0x67   :  { %2145 = dma.done.wait [#allocation3], 4096  }
  0x68   :  { %2146 = vsyncadd [#allocation3], 4294963200 }
  0x69   :  { %2147 = dma.done.wait [#allocation6], 128  }
  0x6a   :  { %2148 = vsyncadd [#allocation6], 4294967168 }
  0x6b   :  { %2149 = dma.done.wait [#allocation9], 8224  }
  0x6c   :  { %2150 = vsyncadd [#allocation9], 4294959072 }
  0x6d   :  { %2151 = dma.done.wait [#allocation12], 16  }
  0x6e   :  { %2152 = vsyncadd [#allocation12], 4294967280  ;;  %v2165_v0 = vmov 0   ;;  %v1807_v1 = vld [vmem:[#allocation2 + $0x4] ss:$16 sps:$4 sm:$0xff]   ;;  %v121_v18 = vld [vmem:[%s2528_s0 + $0x8] sm:$0xff] }
  0x6f   :  { %347 = vmatprep.mubr.bf16.mxu1 %v2165_v0  ;;  %v1809_v2 = vld [vmem:[#allocation2] ss:$16 sps:$4 sm:$0xff]   ;;  %315 = vmatprep.subr.bf16.mxu1 %v1807_v1  ;;  %v1810_v3 = vld [vmem:[#allocation2 + $0x24] ss:$16 sps:$4 sm:$0xff]   ;;  %v1833_v19 = vld [vmem:[#allocation2 + $0xc] ss:$16 sps:$4 sm:$0xff]  }
  0x70   :  { %316 = vmatpush1.bf16.msra.mxu1 %v1809_v2  ;;  %v1812_v4 = vld [vmem:[#allocation2 + $0x20] ss:$16 sps:$4 sm:$0xff]   ;;  %v1813_v5 = vld [vmem:[#allocation2 + $0x44] ss:$16 sps:$4 sm:$0xff]   ;;  %v1831_v20 = vld [vmem:[#allocation2 + $0x8] ss:$16 sps:$4 sm:$0xff]  }
  0x71   :  { %317 = vmatprep.subr.bf16.mxu1 %v1810_v3  ;;  %v1815_v6 = vld [vmem:[#allocation2 + $0x40] ss:$16 sps:$4 sm:$0xff]   ;;  %v1816_v7 = vld [vmem:[#allocation2 + $0x64] ss:$16 sps:$4 sm:$0xff]   ;;  %v1836_v22 = vld [vmem:[#allocation2 + $0x2c] ss:$16 sps:$4 sm:$0xff]  }
  0x72   :  { %v1818_v8 = vld [vmem:[#allocation2 + $0x60] ss:$16 sps:$4 sm:$0xff]   ;;  %v1819_v9 = vld [vmem:[#allocation2 + $0x84] ss:$16 sps:$4 sm:$0xff]   ;;  %v1834_v23 = vld [vmem:[#allocation2 + $0x28] ss:$16 sps:$4 sm:$0xff]  }
  0x73   :  { %v1821_v10 = vld [vmem:[#allocation2 + $0x80] ss:$16 sps:$4 sm:$0xff]   ;;  %v1822_v11 = vld [vmem:[#allocation2 + $0xa4] ss:$16 sps:$4 sm:$0xff]   ;;  %v1839_v24 = vld [vmem:[#allocation2 + $0x4c] ss:$16 sps:$4 sm:$0xff]  }
  0x74   :  { %318 = vmatpush1.bf16.msra.mxu1 %v1812_v4  ;;  %v1824_v12 = vld [vmem:[#allocation2 + $0xa0] ss:$16 sps:$4 sm:$0xff]   ;;  %v1825_v13 = vld [vmem:[#allocation2 + $0xc4] ss:$16 sps:$4 sm:$0xff]   ;;  %v1837_v25 = vld [vmem:[#allocation2 + $0x48] ss:$16 sps:$4 sm:$0xff]  }
  0x75   :  { %319 = vmatprep.subr.bf16.mxu1 %v1813_v5  ;;  %v1827_v14 = vld [vmem:[#allocation2 + $0xc0] ss:$16 sps:$4 sm:$0xff]   ;;  %v1828_v15 = vld [vmem:[#allocation2 + $0xe4] ss:$16 sps:$4 sm:$0xff]   ;;  %v1842_v26 = vld [vmem:[#allocation2 + $0x6c] ss:$16 sps:$4 sm:$0xff]  }
  0x76   :  { %v1830_v16 = vld [vmem:[#allocation2 + $0xe0] ss:$16 sps:$4 sm:$0xff]   ;;  %v1840_v27 = vld [vmem:[#allocation2 + $0x68] ss:$16 sps:$4 sm:$0xff]   ;;  %v1845_v28 = vld [vmem:[#allocation2 + $0x8c] ss:$16 sps:$4 sm:$0xff]  }
  0x77   :  { %v120_v17 = vld [vmem:[%s2528_s0] sm:$0xff]  ;;  %v1843_v29 = vld [vmem:[#allocation2 + $0x88] ss:$16 sps:$4 sm:$0xff]   ;;  %v1848_v30 = vld [vmem:[#allocation2 + $0xac] ss:$16 sps:$4 sm:$0xff]   ;;  %vm2168_vm0 = vmmov 0  }
  0x78   :  { %320 = vmatpush1.bf16.msra.mxu1 %v1815_v6  ;;  %v122_v21 = vpack.c.bf16 %v121_v18, %v120_v17  ;;  %v1846_v31 = vld [vmem:[#allocation2 + $0xa8] ss:$16 sps:$4 sm:$0xff]   ;;  %v1851_v32 = vld [vmem:[#allocation2 + $0xcc] ss:$16 sps:$4 sm:$0xff]   ;;  %vm1544_vm1 = vcmask 261120   ;;  %s2169_s24 = smov [#allocation13]  }
  0x79   :  { %321 = vmatprep.subr.bf16.mxu1 %v1816_v7  ;;  %v1849_v33 = vld [vmem:[#allocation2 + $0xc8] ss:$16 sps:$4 sm:$0xff]   ;;  %v1854_v34 = vld [vmem:[#allocation2 + $0xec] ss:$16 sps:$4 sm:$0xff]   ;;  %s1602_s25 = sshll.u32 %s2169_s24, 4  ;;  %s1603_s25 = int_to_ptr.vmem [resolvable:$true] %s1602_s25 }
  0x7a   :  { %v1852_v35 = vld [vmem:[#allocation2 + $0xe8] ss:$16 sps:$4 sm:$0xff]   ;;  %v1855_v36 = vld [vmem:[#allocation8 + $0x4] ss:$8 sps:$4 sm:$0xff]   ;;  %v1858_v38 = vld [vmem:[#allocation8 + $0x14] ss:$8 sps:$4 sm:$0xff]   ;;  %p2128_p7 = scmp.lt.s32.totalorder %s1603_s25, %s1603_s25 }
  0x7b   :  { %v1857_v37 = vld [vmem:[#allocation8] ss:$8 sps:$4 sm:$0xff]   ;;  %1013 = vmatprep.subr.bf16.mxu0 %v1855_v36  ;;  %v1860_v39 = vld [vmem:[#allocation8 + $0x10] ss:$8 sps:$4 sm:$0xff]   ;;  %v1861_v40 = vld [vmem:[#allocation8 + $0x24] ss:$8 sps:$4 sm:$0xff]  }
  0x7c   :  { %322 = vmatpush1.bf16.msra.mxu1 %v1818_v8  ;;  %1014 = vmatpush1.bf16.msra.mxu0 %v1857_v37  ;;  %v1863_v41 = vld [vmem:[#allocation8 + $0x20] ss:$8 sps:$4 sm:$0xff]   ;;  %v1864_v42 = vld [vmem:[#allocation8 + $0x34] ss:$8 sps:$4 sm:$0xff]   ;;  %v1866_v43 = vld [vmem:[#allocation8 + $0x30] ss:$8 sps:$4 sm:$0xff]  }
  0x7d   :  { %323 = vmatprep.subr.bf16.mxu1 %v1819_v9  ;;  %1015 = vmatprep.subr.bf16.mxu0 %v1858_v38  ;;  %v1867_v44 = vld [vmem:[#allocation8 + $0x44] ss:$8 sps:$4 sm:$0xff]   ;;  %v1869_v45 = vld [vmem:[#allocation8 + $0x40] ss:$8 sps:$4 sm:$0xff]   ;;  %v1870_v46 = vld [vmem:[#allocation8 + $0x54] ss:$8 sps:$4 sm:$0xff]  }
  0x7e   :  { %v1872_v47 = vld [vmem:[#allocation8 + $0x50] ss:$8 sps:$4 sm:$0xff]   ;;  %v1873_v48 = vld [vmem:[#allocation8 + $0x64] ss:$8 sps:$4 sm:$0xff]   ;;  %v1875_v49 = vld [vmem:[#allocation8 + $0x60] ss:$8 sps:$4 sm:$0xff]  }
  0x7f   :  { %v1876_v50 = vld [vmem:[#allocation8 + $0x74] ss:$8 sps:$4 sm:$0xff]   ;;  %v1878_v51 = vld [vmem:[#allocation8 + $0x70] ss:$8 sps:$4 sm:$0xff]   ;;  %v1879_v52 = vld [vmem:[#allocation8 + $0x84] ss:$8 sps:$4 sm:$0xff]  }
  0x80   :  { %324 = vmatpush1.bf16.msra.mxu1 %v1821_v10  ;;  %1016 = vmatpush1.bf16.msra.mxu0 %v1860_v39  ;;  %v1881_v53 = vld [vmem:[#allocation8 + $0x80] ss:$8 sps:$4 sm:$0xff]   ;;  %v1882_v54 = vld [vmem:[#allocation8 + $0x94] ss:$8 sps:$4 sm:$0xff]   ;;  %v1884_v55 = vld [vmem:[#allocation8 + $0x90] ss:$8 sps:$4 sm:$0xff]  }
  0x81   :  { %325 = vmatprep.subr.bf16.mxu1 %v1822_v11  ;;  %1017 = vmatprep.subr.bf16.mxu0 %v1861_v40  ;;  %v1885_v56 = vld [vmem:[#allocation8 + $0xa4] ss:$8 sps:$4 sm:$0xff]   ;;  %v1887_v57 = vld [vmem:[#allocation8 + $0xa0] ss:$8 sps:$4 sm:$0xff]   ;;  %v1888_v58 = vld [vmem:[#allocation8 + $0xb4] ss:$8 sps:$4 sm:$0xff]  }
  0x82   :  { %v1890_v59 = vld [vmem:[#allocation8 + $0xb0] ss:$8 sps:$4 sm:$0xff]   ;;  %v1891_v60 = vld [vmem:[#allocation8 + $0xc4] ss:$8 sps:$4 sm:$0xff]   ;;  %v1893_v61 = vld [vmem:[#allocation8 + $0xc0] ss:$8 sps:$4 sm:$0xff]  }
  0x83   :  { %v1894_v62 = vld [vmem:[#allocation8 + $0xd4] ss:$8 sps:$4 sm:$0xff]   ;;  %v1896_v63 = vld [vmem:[#allocation8 + $0xd0] ss:$8 sps:$4 sm:$0xff]   ;;  %v1899_v1 = vld [vmem:[#allocation8 + $0xe0] ss:$8 sps:$4 sm:$0xff]  }
  0x84   :  { %326 = vmatpush1.bf16.msra.mxu1 %v1824_v12  ;;  %1018 = vmatpush1.bf16.msra.mxu0 %v1863_v41  ;;  %v1900_v2 = vld [vmem:[#allocation8 + $0xf4] ss:$8 sps:$4 sm:$0xff]   ;;  %v1902_v3 = vld [vmem:[#allocation8 + $0xf0] ss:$8 sps:$4 sm:$0xff]   ;;  %v1905_v4 = vld [vmem:[#allocation8 + $0x104] ss:$8 sps:$4 sm:$0xff]  }
  0x85   :  { %327 = vmatprep.subr.bf16.mxu1 %v1825_v13  ;;  %1019 = vmatprep.subr.bf16.mxu0 %v1864_v42 }
  0x88   :  { %328 = vmatpush1.bf16.msra.mxu1 %v1827_v14  ;;  %1020 = vmatpush1.bf16.msra.mxu0 %v1866_v43 }
  0x89   :  { %329 = vmatprep.subr.bf16.mxu1 %v1828_v15  ;;  %1021 = vmatprep.subr.bf16.mxu0 %v1867_v44 }
  0x8c   :  { %330 = vmatpush1.bf16.msra.mxu1 %v1830_v16  ;;  %1022 = vmatpush1.bf16.msra.mxu0 %v1869_v45 }
  0x8d   :  { %358 = vmatprep.subr.bf16.mxu1 %v1833_v19  ;;  %1023 = vmatprep.subr.bf16.mxu0 %v1870_v46 }
  0x8f   :  { %348 = vmatmul.mubr.bf16.vlgmr.msra.gmra.mrb[0].mxu1 %v122_v21 }
  0x90   :  { %359 = vmatpush1.bf16.msra.mxu1 %v1831_v20  ;;  %390 = vmatprep.mubr.bf16.mxu1 %v2165_v0  ;;  %v1897_v0 = vld [vmem:[#allocation8 + $0xe4] ss:$8 sps:$4 sm:$0xff]  }
  0x91   :  { %360 = vmatprep.subr.bf16.mxu1 %v1836_v22  ;;  %1024 = vmatpush1.bf16.msra.mxu0 %v1872_v47 }
  0x92   :  { %1025 = vmatprep.subr.bf16.mxu0 %v1873_v48 }
  0x94   :  { %361 = vmatpush1.bf16.msra.mxu1 %v1834_v23 }
  0x95   :  { %362 = vmatprep.subr.bf16.mxu1 %v1839_v24  ;;  %1026 = vmatpush1.bf16.msra.mxu0 %v1875_v49 }
  0x96   :  { %1027 = vmatprep.subr.bf16.mxu0 %v1876_v50 }
  0x98   :  { %363 = vmatpush1.bf16.msra.mxu1 %v1837_v25 }
  0x99   :  { %364 = vmatprep.subr.bf16.mxu1 %v1842_v26  ;;  %1028 = vmatpush1.bf16.msra.mxu0 %v1878_v51 }
  0x9a   :  { %1029 = vmatprep.subr.bf16.mxu0 %v1879_v52 }
  0x9c   :  { %365 = vmatpush1.bf16.msra.mxu1 %v1840_v27 }
  0x9d   :  { %366 = vmatprep.subr.bf16.mxu1 %v1845_v28  ;;  %1030 = vmatpush1.bf16.msra.mxu0 %v1881_v53 }
  0x9e   :  { %1031 = vmatprep.subr.bf16.mxu0 %v1882_v54 }
  0xa0   :  { %367 = vmatpush1.bf16.msra.mxu1 %v1843_v29 }
  0xa1   :  { %368 = vmatprep.subr.bf16.mxu1 %v1848_v30  ;;  %1032 = vmatpush1.bf16.msra.mxu0 %v1884_v55 }
  0xa2   :  { %1033 = vmatprep.subr.bf16.mxu0 %v1885_v56 }
  0xa4   :  { %369 = vmatpush1.bf16.msra.mxu1 %v1846_v31 }
  0xa5   :  { %370 = vmatprep.subr.bf16.mxu1 %v1851_v32  ;;  %1034 = vmatpush1.bf16.msra.mxu0 %v1887_v57 }
  0xa6   :  { %1035 = vmatprep.subr.bf16.mxu0 %v1888_v58 }
  0xa8   :  { %371 = vmatpush1.bf16.msra.mxu1 %v1849_v33 }
  0xa9   :  { %372 = vmatprep.subr.bf16.mxu1 %v1854_v34  ;;  %1036 = vmatpush1.bf16.msra.mxu0 %v1890_v59 }
  0xaa   :  { %1037 = vmatprep.subr.bf16.mxu0 %v1891_v60 }
  0xac   :  { %373 = vmatpush1.bf16.msra.mxu1 %v1852_v35 }
  0xad   :  { %1038 = vmatpush1.bf16.msra.mxu0 %v1893_v61 }
  0xae   :  { %1039 = vmatprep.subr.bf16.mxu0 %v1894_v62 }
  0xaf   :  { %391 = vmatmul.mubr.bf16.vlgmr.msra.gmra.mrb[4].mxu1 %v122_v21 }
  0xb1   :  { %1040 = vmatpush1.bf16.msra.mxu0 %v1896_v63 }
  0xb2   :  { %1041 = vmatprep.subr.bf16.mxu0 %v1897_v0 }
  0xb5   :  { %1042 = vmatpush1.bf16.msra.mxu0 %v1899_v1 }
  0xb6   :  { %1043 = vmatprep.subr.bf16.mxu0 %v1900_v2 }
  0xb9   :  { %1044 = vmatpush1.bf16.msra.mxu0 %v1902_v3 }
  0xba   :  { %1056 = vmatprep.subr.bf16.mxu0 %v1905_v4 }
 0x162   :  { %v2328_v5 = vpop.f32.mrb[0].mxu1 }
 0x163   :  { %v429_v6 = vmul.f32 %v2328_v5, %v2328_v5  ;;  %v2332_v7 = vpop.f32.mrb[1].mxu1 }
 0x164   :  { %v2334_v8 = vpop.f32.mrb[2].mxu1  ;;  %v430_v12 = vmul.f32 %v2332_v7, %v2332_v7 }
 0x165   :  { %v401_v9 = vadd.f32 %v2334_v8, %v2328_v5  ;;  %v433_v10 = vmul.f32 %v2334_v8, %v2334_v8  ;;  %v2340_v11 = vpop.f32.mrb[3].mxu1 }
 0x166   :  { %v408_v13 = vadd.f32 %v2340_v11, %v2332_v7  ;;  %v434_v14 = vmul.f32 %v2340_v11, %v2340_v11 }
 0x167   :  { %v402_v15 = vrot.slane %v401_v9, 4  ;;  %v437_v16 = vadd.f32 %v433_v10, %v429_v6 }
 0x168   :  { %v409_v17 = vrot.slane %v408_v13, 4  ;;  %v444_v18 = vadd.f32 %v434_v14, %v430_v12 }
 0x169   :  { %v403_v19 = vadd.f32 %v402_v15, %v401_v9  ;;  %v438_v20 = vrot.slane %v437_v16, 4 }
 0x16a   :  { %v410_v21 = vadd.f32 %v409_v17, %v408_v13  ;;  %v445_v22 = vrot.slane %v444_v18, 4 }
 0x16b   :  { %v404_v23 = vrot.slane %v403_v19, 2  ;;  %v439_v24 = vadd.f32 %v438_v20, %v437_v16 }
 0x16c   :  { %v411_v25 = vrot.slane %v410_v21, 2  ;;  %v446_v26 = vadd.f32 %v445_v22, %v444_v18 }
 0x16d   :  { %v405_v27 = vadd.f32 %v404_v23, %v403_v19  ;;  %v440_v28 = vrot.slane %v439_v24, 2 }
 0x16e   :  { %v412_v29 = vadd.f32 %v411_v25, %v410_v21  ;;  %v447_v30 = vrot.slane %v446_v26, 2 }
 0x16f   :  { %v406_v31 = vrot.slane %v405_v27, 1  ;;  %v441_v32 = vadd.f32 %v440_v28, %v439_v24 }
 0x170   :  { %v413_v33 = vrot.slane %v412_v29, 1  ;;  %v448_v34 = vadd.f32 %v447_v30, %v446_v26 }
 0x171   :  { %v407_v35 = vadd.f32 %v406_v31, %v405_v27  ;;  %v442_v36 = vrot.slane %v441_v32, 1 }
 0x172   :  { %v414_v37 = vadd.f32 %v413_v33, %v412_v29  ;;  %v449_v38 = vrot.slane %v448_v34, 1 }
 0x173   :  { %v443_v39 = vadd.f32 %v442_v36, %v441_v32  ;;  %v2348_v40 = vmul.f32 0.0625, %v407_v35 }
 0x174   :  { %v450_v41 = vadd.f32 %v449_v38, %v448_v34  ;;  %v2350_v42 = vmul.f32 0.0625, %v414_v37 }
 0x175   :  { %v469_v43 = vmul.f32 0.0625, %v443_v39  ;;  %v473_v44 = vmul.f32 %v2348_v40, %v2348_v40 }
 0x176   :  { %v470_v45 = vmul.f32 0.0625, %v450_v41  ;;  %v474_v46 = vmul.f32 %v2350_v42, %v2350_v42 }
 0x177   :  { %v477_v47 = vsub.f32 %v469_v43, %v473_v44 }
 0x178   :  { %v478_v48 = vsub.f32 %v470_v45, %v474_v46  ;;  %v2166_v46 = vmov 1966171168  }
 0x179   :  { %v481_v49 = vmax.f32 %v477_v47, 0.0  ;;  %v501_v47 = vunpack.c.l.s4 %v2166_v46  ;;  %v1903_v46 = vld [vmem:[#allocation8 + $0x100] ss:$8 sps:$4 sm:$0xff]  }
 0x17a   :  { %v482_v50 = vmax.f32 %v478_v48, 0.0  ;;  %v503_v48 = vlaneseq }
 0x17b   :  { %v486_v51 = vadd.f32 1e-05, %v481_v49  ;;  %v502_v49 = vunpack.c.0.s8 %v501_v47 }
 0x17c   :  { %v487_v52 = vadd.f32 1e-05, %v482_v50  ;;  %v504_v50 = vshrl.u32 %v503_v48, 7 }
 0x17d   :  { %1975 = vrsqrt.f32 %v486_v51 }
 0x17e   :  { %1977 = vrsqrt.f32 %v487_v52  ;;  %v2376_v52 = vsub.s32 %v502_v49, %v504_v50  ;;  %v1908_v49 = vld [vmem:[#allocation8 + $0x114] ss:$8 sps:$4 sm:$0xff]  }
 0x182   :  { %v2356_v53 = vpop.f32.mrb[4].mxu1 }
 0x183   :  { %v2358_v54 = vpop.f32.mrb[5].mxu1  ;;  %v431_v56 = vmul.f32 %v2356_v53, %v2356_v53 }
 0x184   :  { %v2360_v55 = vpop.f32.mrb[6].mxu1  ;;  %v432_v60 = vmul.f32 %v2358_v54, %v2358_v54 }
 0x185   :  { %v415_v57 = vadd.f32 %v2360_v55, %v2356_v53  ;;  %v435_v58 = vmul.f32 %v2360_v55, %v2360_v55  ;;  %v2368_v59 = vpop.f32.mrb[7].mxu1 }
 0x186   :  { %v422_v61 = vadd.f32 %v2368_v59, %v2358_v54  ;;  %v436_v62 = vmul.f32 %v2368_v59, %v2368_v59 }
 0x187   :  { %v1976_v63 = vpop.eup %1975  ;;  %v416_v0 = vrot.slane %v415_v57, 4  ;;  %v451_v1 = vadd.f32 %v435_v58, %v431_v56 }
 0x188   :  { %v1978_v2 = vpop.eup %1977  ;;  %v423_v3 = vrot.slane %v422_v61, 4  ;;  %v458_v4 = vadd.f32 %v436_v62, %v432_v60  ;;  %v485_v62 = vld [vmem:[#allocation5] sm:$0xf] }
 0x189   :  { %v417_v6 = vadd.f32 %v416_v0, %v415_v57  ;;  %v452_v9 = vrot.slane %v451_v1, 4  ;;  %v498_v10 = vcombine.low %v1976_v63, %v1978_v2  ;;  %v2380_v63 = vsub.s32 0, %v504_v50 }
 0x18a   :  { %v424_v12 = vadd.f32 %v423_v3, %v422_v61  ;;  %v459_v13 = vrot.slane %v458_v4, 4  ;;  %v536_v2 = vsub.s32 2, %v504_v50  ;;  %v540_v3 = vsub.s32 3, %v504_v50 }
 0x18b   :  { %v418_v14 = vrot.slane %v417_v6, 2  ;;  %v453_v15 = vadd.f32 %v452_v9, %v451_v1  ;;  %v506_v58 = vrot.slane %v498_v10, %v2376_v52  ;;  %v2383_v1 = vsub.s32 1, %v504_v50 }
 0x18c   :  { %v425_v16 = vrot.slane %v424_v12, 2  ;;  %v460_v17 = vadd.f32 %v459_v13, %v458_v4 }
 0x18d   :  { %v419_v18 = vadd.f32 %v418_v14, %v417_v6  ;;  %v454_v19 = vrot.slane %v453_v15, 2 }
 0x18e   :  { %v426_v20 = vadd.f32 %v425_v16, %v424_v12  ;;  %v461_v21 = vrot.slane %v460_v17, 2 }
 0x18f   :  { %v420_v22 = vrot.slane %v419_v18, 1  ;;  %v455_v23 = vadd.f32 %v454_v19, %v453_v15 }
 0x190   :  { %v427_v24 = vrot.slane %v426_v20, 1  ;;  %v462_v25 = vadd.f32 %v461_v21, %v460_v17 }
 0x191   :  { %v421_v26 = vadd.f32 %v420_v22, %v419_v18  ;;  %v456_v27 = vrot.slane %v455_v23, 1 }
 0x192   :  { %v428_v28 = vadd.f32 %v427_v24, %v426_v20  ;;  %v463_v29 = vrot.slane %v462_v25, 1 }
 0x193   :  { %v457_v30 = vadd.f32 %v456_v27, %v455_v23  ;;  %v467_v31 = vmul.f32 0.0625, %v421_v26 }
 0x194   :  { %v464_v32 = vadd.f32 %v463_v29, %v462_v25  ;;  %v468_v33 = vmul.f32 0.0625, %v428_v28 }
 0x195   :  { %v471_v34 = vmul.f32 0.0625, %v457_v30  ;;  %v475_v35 = vmul.f32 %v467_v31, %v467_v31 }
 0x196   :  { %v472_v36 = vmul.f32 0.0625, %v464_v32  ;;  %v476_v37 = vmul.f32 %v468_v33, %v468_v33 }
 0x197   :  { %v479_v38 = vsub.f32 %v471_v34, %v475_v35 }
 0x198   :  { %v480_v39 = vsub.f32 %v472_v36, %v476_v37 }
 0x199   :  { %v483_v41 = vmax.f32 %v479_v38, 0.0 }
 0x19a   :  { %v484_v43 = vmax.f32 %v480_v39, 0.0 }
 0x19b   :  { %v488_v44 = vadd.f32 1e-05, %v483_v41 }
 0x19c   :  { %v489_v45 = vadd.f32 1e-05, %v484_v43 }
 0x19d   :  { %1979 = vrsqrt.f32 %v488_v44 }
 0x19e   :  { %1981 = vrsqrt.f32 %v489_v45 }
 0x1a7   :  { %v1980_v51 = vpop.eup %1979 }
 0x1a8   :  { %v1982_v56 = vpop.eup %1981 }
 0x1a9   :  { %v499_v57 = vcombine.low %v1980_v51, %v1982_v56  ;;  %v1906_v51 = vld [vmem:[#allocation8 + $0x110] ss:$8 sps:$4 sm:$0xff]   ;;  %v1911_v56 = vld [vmem:[#allocation8 + $0x124] ss:$8 sps:$4 sm:$0xff]  }
 0x1ab   :  { %v513_v60 = vrot.slane %v499_v57, %v2376_v52  ;;  %v1909_v57 = vld [vmem:[#allocation8 + $0x120] ss:$8 sps:$4 sm:$0xff]  }
 0x1ad   :  { %v514_v61 = vcombine.low %v506_v58, %v513_v60  ;;  %v1914_v58 = vld [vmem:[#allocation8 + $0x134] ss:$8 sps:$4 sm:$0xff]   ;;  %v1912_v60 = vld [vmem:[#allocation8 + $0x130] ss:$8 sps:$4 sm:$0xff]  }
 0x1af   :  { %v521_v0 = vrot.slane %v514_v61, %v2376_v52  ;;  %v1917_v61 = vld [vmem:[#allocation8 + $0x144] ss:$8 sps:$4 sm:$0xff]  }
 0x1b1   :  { %v523_v4 = vmul.f32 %v521_v0, %v485_v62  ;;  %v1915_v62 = vld [vmem:[#allocation8 + $0x140] ss:$8 sps:$4 sm:$0xff]   ;;  %v1920_v0 = vld [vmem:[#allocation8 + $0x154] ss:$8 sps:$4 sm:$0xff]  }
 0x1b3   :  { %v529_v6 = vrot.slane %v523_v4, %v2380_v63  ;;  %v533_v9 = vrot.slane %v523_v4, %v2383_v1  ;;  %v537_v12 = vrot.slane %v523_v4, %v536_v2  ;;  %v541_v13 = vrot.slane %v523_v4, %v540_v3  ;;  %v1921_v4 = vld [vmem:[#allocation8 + $0x160] ss:$8 sps:$4 sm:$0xff]  }
 0x1b5   :  { %v546_v10 = vmul.f32 %v529_v6, %v2348_v40  ;;  %v547_v14 = vmul.f32 %v533_v9, %v2350_v42  ;;  %v548_v15 = vmul.f32 %v537_v12, %v467_v31  ;;  %v549_v16 = vmul.f32 %v541_v13, %v468_v33 }
 0x1b6   :  { %v587_v17 = vmul.f32 %v541_v13, %v2368_v59  ;;  %v581_v18 = vmul.f32 %v533_v9, %v2332_v7  ;;  %v585_v19 = vmul.f32 %v533_v9, %v2340_v11  ;;  %v580_v20 = vmul.f32 %v529_v6, %v2328_v5  ;;  %v524_v7 = vld [vmem:[#allocation7] sm:$0xf]  ;;  %v1924_v9 = vld [vmem:[#allocation8 + $0x170] ss:$8 sps:$4 sm:$0xff]  }
 0x1b7   :  { %v554_v21 = vcombine.low %v546_v10, %v547_v14  ;;  %v555_v22 = vcombine.low %v548_v15, %v549_v16  ;;  %v584_v23 = vmul.f32 %v529_v6, %v2334_v8  ;;  %v583_v24 = vmul.f32 %v541_v13, %v2358_v54  ;;  %v1926_v6 = vld [vmem:[#allocation8 + $0x174] ss:$8 sps:$4 sm:$0xff]   ;;  %v1927_v13 = vld [vmem:[#allocation8 + $0x180] ss:$8 sps:$4 sm:$0xff]   ;;  %v1930_v14 = vld [vmem:[#allocation8 + $0x190] ss:$8 sps:$4 sm:$0xff]  }
 0x1b8   :  { %v582_v40 = vmul.f32 %v537_v12, %v2356_v53  ;;  %v586_v42 = vmul.f32 %v537_v12, %v2360_v55  ;;  %v1929_v12 = vld [vmem:[#allocation8 + $0x184] ss:$8 sps:$4 sm:$0xff]   ;;  %v1932_v10 = vld [vmem:[#allocation8 + $0x194] ss:$8 sps:$4 sm:$0xff]   ;;  %v1933_v16 = vld [vmem:[#allocation8 + $0x1a0] ss:$8 sps:$4 sm:$0xff]  }
 0x1b9   :  { %v562_v25 = vrot.slane %v554_v21, %v2376_v52  ;;  %v569_v59 = vrot.slane %v555_v22, %v2376_v52  ;;  %v1935_v15 = vld [vmem:[#allocation8 + $0x1a4] ss:$8 sps:$4 sm:$0xff]   ;;  %v1944_v21 = vld [vmem:[#allocation8 + $0x1d4] ss:$8 sps:$4 sm:$0xff]   ;;  %v1942_v22 = vld [vmem:[#allocation8 + $0x1d0] ss:$8 sps:$4 sm:$0xff]  }
 0x1bb   :  { %v570_v26 = vcombine.low %v562_v25, %v569_v59  ;;  %v1951_v25 = vld [vmem:[%s2535_s7 + $0x40] sm:$0xff]  }
 0x1bc   :  { %v1952_v59 = vld [vmem:[%s2535_s7] sm:$0xff]   ;;  %1737 = vmatprep.subr.bf16.mxu1 %v1951_v25 }
 0x1bd   :  { %v577_v11 = vrot.slane %v570_v26, %v2376_v52  ;;  %1738 = vmatpush3.bf16.msra.mxu1 %v1952_v59  ;;  %v1953_v26 = vld [vmem:[%s2535_s7 + $0x48] sm:$0xff]  }
 0x1be   :  { %1739 = vmatprep.subr.bf16.mxu1 %v1953_v26 }
 0x1bf   :  { %v579_v27 = vsub.f32 %v524_v7, %v577_v11  ;;  %v1954_v7 = vld [vmem:[%s2535_s7 + $0x8] sm:$0xff]   ;;  %v1955_v11 = vld [vmem:[%s2535_s7 + $0x50] sm:$0xff]  }
 0x1c1   :  { %v604_v5 = vrot.slane %v579_v27, %v540_v3  ;;  %v596_v28 = vrot.slane %v579_v27, %v2383_v1  ;;  %v592_v8 = vrot.slane %v579_v27, %v2380_v63  ;;  %v600_v29 = vrot.slane %v579_v27, %v536_v2  ;;  %v1918_v2 = vld [vmem:[#allocation8 + $0x150] ss:$8 sps:$4 sm:$0xff]   ;;  %v1923_v3 = vld [vmem:[#allocation8 + $0x164] ss:$8 sps:$4 sm:$0xff]   ;;  %1740 = vmatpush3.bf16.msra.mxu1 %v1954_v7 }
 0x1c2   :  { %v1956_v27 = vld [vmem:[%s2535_s7 + $0x10] sm:$0xff]   ;;  %1741 = vmatprep.subr.bf16.mxu1 %v1955_v11 }
 0x1c3   :  { %v616_v54 = vadd.f32 %v604_v5, %v587_v17  ;;  %v610_v30 = vadd.f32 %v596_v28, %v581_v18  ;;  %v614_v53 = vadd.f32 %v596_v28, %v585_v19  ;;  %v609_v31 = vadd.f32 %v592_v8, %v580_v20  ;;  %v1938_v17 = vld [vmem:[#allocation8 + $0x1b4] ss:$8 sps:$4 sm:$0xff]   ;;  %v1936_v18 = vld [vmem:[#allocation8 + $0x1b0] ss:$8 sps:$4 sm:$0xff]   ;;  %v1941_v19 = vld [vmem:[#allocation8 + $0x1c4] ss:$8 sps:$4 sm:$0xff]  }
 0x1c4   :  { %v613_v55 = vadd.f32 %v592_v8, %v584_v23  ;;  %v612_v32 = vadd.f32 %v604_v5, %v583_v24  ;;  %v611_v33 = vadd.f32 %v600_v29, %v582_v40  ;;  %v615_v34 = vadd.f32 %v600_v29, %v586_v42  ;;  %v1939_v20 = vld [vmem:[#allocation8 + $0x1c0] ss:$8 sps:$4 sm:$0xff]   ;;  %v1947_v23 = vld [vmem:[#allocation8 + $0x1e4] ss:$8 sps:$4 sm:$0xff]   ;;  %v1950_v40 = vld [vmem:[#allocation8 + $0x1f4] ss:$8 sps:$4 sm:$0xff]  }
 0x1c5   :  { %v618_v35 = vmax.f32 %v610_v30, 0.0  ;;  %v622_v36 = vmax.f32 %v614_v53, 0.0  ;;  %v617_v37 = vmax.f32 %v609_v31, 0.0  ;;  %v624_v38 = vmax.f32 %v616_v54, 0.0  ;;  %v1945_v24 = vld [vmem:[#allocation8 + $0x1e0] ss:$8 sps:$4 sm:$0xff]   ;;  %1742 = vmatpush3.bf16.msra.mxu1 %v1956_v27 }
 0x1c6   :  { %v621_v39 = vmax.f32 %v613_v55, 0.0  ;;  %v620_v41 = vmax.f32 %v612_v32, 0.0  ;;  %v619_v43 = vmax.f32 %v611_v33, 0.0  ;;  %v623_v44 = vmax.f32 %v615_v34, 0.0  ;;  %v1948_v42 = vld [vmem:[#allocation8 + $0x1f0] ss:$8 sps:$4 sm:$0xff]  }
 0x1c7   :  { %v626_v45 = vpack.c.bf16 %v622_v36, %v618_v35  ;;  %v1957_v5 = vld [vmem:[%s2535_s7 + $0x58] sm:$0xff]   ;;  %v1959_v8 = vld [vmem:[%s2535_s7 + $0x60] sm:$0xff]   ;;  %v1961_v54 = vld [vmem:[%s2535_s7 + $0x68] sm:$0xff]  }
 0x1c8   :  { %v625_v47 = vpack.c.bf16 %v621_v39, %v617_v37  ;;  %v628_v48 = vpack.c.bf16 %v624_v38, %v620_v41  ;;  %v2402_v50 = vpack.c.bf16 %v623_v44, %v619_v43  ;;  %v1958_v28 = vld [vmem:[%s2535_s7 + $0x18] sm:$0xff]   ;;  %1743 = vmatprep.subr.bf16.mxu1 %v1957_v5  ;;  %v1960_v29 = vld [vmem:[%s2535_s7 + $0x20] sm:$0xff]   ;;  %v1962_v30 = vld [vmem:[%s2535_s7 + $0x28] sm:$0xff]  }
 0x1c9   :  { %1045 = vmatprep.mubr.bf16.mxu0 %v626_v45  ;;  %1744 = vmatpush3.bf16.msra.mxu1 %v1958_v28  ;;  %v1963_v53 = vld [vmem:[%s2535_s7 + $0x70] sm:$0xff]   ;;  %v1965_v55 = vld [vmem:[%s2535_s7 + $0x78] sm:$0xff]   ;;  %v1141_v28 = vld [vmem:[%s2533_s5] sm:$0x3] }
 0x1ca   :  { %1046 = vmatmul.mubr.bf16.vlgmr.msra.gmra.mrb[0].mxu0 %v625_v47  ;;  %1745 = vmatprep.subr.bf16.mxu1 %v1959_v8  ;;  %v1964_v31 = vld [vmem:[%s2535_s7 + $0x30] sm:$0xff]   ;;  %v1966_v32 = vld [vmem:[%s2535_s7 + $0x38] sm:$0xff]  }
 0x1cb   :  { %1057 = vmatpush1.bf16.msra.mxu0 %v1903_v46  ;;  %1088 = vmatprep.mubr.bf16.mxu0 %v628_v48 }
 0x1cc   :  { %1058 = vmatprep.subr.bf16.mxu0 %v1908_v49 }
 0x1cd   :  { %1746 = vmatpush3.bf16.msra.mxu1 %v1960_v29 }
 0x1ce   :  { %1747 = vmatprep.subr.bf16.mxu1 %v1961_v54 }
 0x1cf   :  { %1059 = vmatpush1.bf16.msra.mxu0 %v1906_v51 }
 0x1d0   :  { %1060 = vmatprep.subr.bf16.mxu0 %v1911_v56 }
 0x1d1   :  { %1748 = vmatpush3.bf16.msra.mxu1 %v1962_v30 }
 0x1d2   :  { %1749 = vmatprep.subr.bf16.mxu1 %v1963_v53 }
 0x1d3   :  { %1061 = vmatpush1.bf16.msra.mxu0 %v1909_v57 }
 0x1d4   :  { %1062 = vmatprep.subr.bf16.mxu0 %v1914_v58 }
 0x1d5   :  { %1750 = vmatpush3.bf16.msra.mxu1 %v1964_v31 }
 0x1d6   :  { %1751 = vmatprep.subr.bf16.mxu1 %v1965_v55 }
 0x1d7   :  { %1063 = vmatpush1.bf16.msra.mxu0 %v1912_v60 }
 0x1d8   :  { %1064 = vmatprep.subr.bf16.mxu0 %v1917_v61 }
 0x1d9   :  { %1752 = vmatpush3.bf16.msra.mxu1 %v1966_v32 }
 0x1db   :  { %1065 = vmatpush1.bf16.msra.mxu0 %v1915_v62 }
 0x1dc   :  { %1066 = vmatprep.subr.bf16.mxu0 %v1920_v0 }
 0x1df   :  { %1067 = vmatpush1.bf16.msra.mxu0 %v1918_v2 }
 0x1e0   :  { %1068 = vmatprep.subr.bf16.mxu0 %v1923_v3 }
 0x1e3   :  { %1069 = vmatpush1.bf16.msra.mxu0 %v1921_v4 }
 0x1e4   :  { %1070 = vmatprep.subr.bf16.mxu0 %v1926_v6 }
 0x1e7   :  { %1071 = vmatpush1.bf16.msra.mxu0 %v1924_v9 }
 0x1e8   :  { %1072 = vmatprep.subr.bf16.mxu0 %v1929_v12 }
 0x1eb   :  { %1073 = vmatpush1.bf16.msra.mxu0 %v1927_v13 }
 0x1ec   :  { %1074 = vmatprep.subr.bf16.mxu0 %v1932_v10 }
 0x1ef   :  { %1075 = vmatpush1.bf16.msra.mxu0 %v1930_v14 }
 0x1f0   :  { %1076 = vmatprep.subr.bf16.mxu0 %v1935_v15 }
 0x1f3   :  { %1077 = vmatpush1.bf16.msra.mxu0 %v1933_v16 }
 0x1f4   :  { %1078 = vmatprep.subr.bf16.mxu0 %v1938_v17 }
 0x1f7   :  { %1079 = vmatpush1.bf16.msra.mxu0 %v1936_v18 }
 0x1f8   :  { %1080 = vmatprep.subr.bf16.mxu0 %v1941_v19 }
 0x1fb   :  { %1081 = vmatpush1.bf16.msra.mxu0 %v1939_v20 }
 0x1fc   :  { %1082 = vmatprep.subr.bf16.mxu0 %v1944_v21 }
 0x1ff   :  { %1083 = vmatpush1.bf16.msra.mxu0 %v1942_v22 }
 0x200   :  { %1084 = vmatprep.subr.bf16.mxu0 %v1947_v23 }
 0x203   :  { %1085 = vmatpush1.bf16.msra.mxu0 %v1945_v24 }
 0x204   :  { %1086 = vmatprep.subr.bf16.mxu0 %v1950_v40 }
 0x207   :  { %1087 = vmatpush1.bf16.msra.mxu0 %v1948_v42 }
 0x20a   :  { %1089 = vmatmul.mubr.bf16.vlgmr.msra.gmra.mrb[0].mxu0 %v2402_v50 }
 0x2dd   :  { %v2453_v33 = vpop.f32.mrb[0].mxu0 }
 0x2de   :  { %v1092_v34 = vpop.f32.mrb[1].mxu0  ;;  %v1113_v36 = vmul.f32 %v2453_v33, %v2453_v33 }
 0x2df   :  { %v1094_v35 = vpop.f32.mrb[2].mxu0  ;;  %v1114_v41 = vmul.f32 %v1092_v34, %v1092_v34 }
 0x2e0   :  { %v1099_v37 = vadd.f32 %v1094_v35, %v2453_v33  ;;  %v1115_v38 = vmul.f32 %v1094_v35, %v1094_v35  ;;  %v1096_v39 = vpop.f32.mrb[3].mxu0 }
 0x2e1   :  { %v1106_v43 = vadd.f32 %v1096_v39, %v1092_v34  ;;  %v1116_v44 = vmul.f32 %v1096_v39, %v1096_v39 }
 0x2e2   :  { %v1100_v45 = vrot.slane %v1099_v37, 4  ;;  %v1117_v46 = vadd.f32 %v1115_v38, %v1113_v36 }
 0x2e3   :  { %v1107_v47 = vrot.slane %v1106_v43, 4  ;;  %v1124_v48 = vadd.f32 %v1116_v44, %v1114_v41 }
 0x2e4   :  { %v1101_v49 = vadd.f32 %v1100_v45, %v1099_v37  ;;  %v1118_v50 = vrot.slane %v1117_v46, 4 }
 0x2e5   :  { %v1108_v51 = vadd.f32 %v1107_v47, %v1106_v43  ;;  %v1125_v56 = vrot.slane %v1124_v48, 4  ;;  %v1165_v43 = vld [vmem:[#allocation10] sm:$0x3] }
 0x2e6   :  { %v1102_v57 = vrot.slane %v1101_v49, 2  ;;  %v1119_v58 = vadd.f32 %v1118_v50, %v1117_v46 }
 0x2e7   :  { %v1109_v60 = vrot.slane %v1108_v51, 2  ;;  %v1126_v61 = vadd.f32 %v1125_v56, %v1124_v48 }
 0x2e8   :  { %v1103_v62 = vadd.f32 %v1102_v57, %v1101_v49  ;;  %v1120_v0 = vrot.slane %v1119_v58, 2 }
 0x2e9   :  { %v1110_v2 = vadd.f32 %v1109_v60, %v1108_v51  ;;  %v1127_v3 = vrot.slane %v1126_v61, 2  ;;  %v1969_v60 = vld [vmem:[%s2538_s10 + $0x10] sm:$0xff]  }
 0x2ea   :  { %v1104_v4 = vrot.slane %v1103_v62, 1  ;;  %v1121_v6 = vadd.f32 %v1120_v0, %v1119_v58  ;;  %v2167_v58 = vmov 0.0   ;;  %v1972_v0 = vld [vmem:[%s2538_s10 + $0x28] sm:$0xff]  }
 0x2eb   :  { %v1111_v9 = vrot.slane %v1110_v2, 1  ;;  %v1128_v12 = vadd.f32 %v1127_v3, %v1126_v61  ;;  %1768 = vmatprep.subr.bf16.mxu1 %v2167_v58  ;;  %v1970_v61 = vld [vmem:[%s2538_s10 + $0x18] sm:$0xff]  }
 0x2ec   :  { %v1105_v13 = vadd.f32 %v1104_v4, %v1103_v62  ;;  %v1122_v10 = vrot.slane %v1121_v6, 1  ;;  %v1971_v62 = vld [vmem:[%s2538_s10 + $0x20] sm:$0xff]   ;;  %v1974_v3 = vld [vmem:[%s2538_s10 + $0x38] sm:$0xff]  }
 0x2ed   :  { %v1112_v14 = vadd.f32 %v1111_v9, %v1110_v2  ;;  %v1129_v15 = vrot.slane %v1128_v12, 1  ;;  %v1973_v2 = vld [vmem:[%s2538_s10 + $0x30] sm:$0xff]  }
 0x2ee   :  { %v1123_v16 = vadd.f32 %v1122_v10, %v1121_v6  ;;  %v1131_v17 = vmul.f32 0.0625, %v1105_v13 }
 0x2ef   :  { %v1130_v18 = vadd.f32 %v1129_v15, %v1128_v12  ;;  %v1132_v19 = vmul.f32 0.0625, %v1112_v14 }
 0x2f0   :  { %v1133_v20 = vmul.f32 0.0625, %v1123_v16  ;;  %v1135_v21 = vmul.f32 %v1131_v17, %v1131_v17 }
 0x2f1   :  { %v1134_v22 = vmul.f32 0.0625, %v1130_v18  ;;  %v1136_v23 = vmul.f32 %v1132_v19, %v1132_v19 }
 0x2f2   :  { %v1137_v24 = vsub.f32 %v1133_v20, %v1135_v21 }
 0x2f3   :  { %v1138_v40 = vsub.f32 %v1134_v22, %v1136_v23 }
 0x2f4   :  { %v1139_v42 = vmax.f32 %v1137_v24, 0.0 }
 0x2f5   :  { %v1140_v25 = vmax.f32 %v1138_v40, 0.0 }
 0x2f6   :  { %v1142_v59 = vadd.f32 1e-05, %v1139_v42 }
 0x2f7   :  { %v1143_v26 = vadd.f32 1e-05, %v1140_v25 }
 0x2f8   :  { %1983 = vrsqrt.f32 %v1142_v59 }
 0x2f9   :  { %1985 = vrsqrt.f32 %v1143_v26 }
 0x302   :  { %v1984_v7 = vpop.eup %1983 }
 0x303   :  { %v1986_v11 = vpop.eup %1985 }
 0x304   :  { %v1148_v27 = vcombine.low %v1984_v7, %v1986_v11 }
 0x306   :  { %v1155_v5 = vrot.slane %v1148_v27, %v2376_v52 }
 0x308   :  { %v1162_v8 = vrot.slane %v1155_v5, %v2376_v52 }
 0x30a   :  { %v1164_v29 = vmul.f32 %v1162_v8, %v1141_v28 }
 0x30c   :  { %v1170_v54 = vrot.slane %v1164_v29, %v2380_v63  ;;  %v1174_v30 = vrot.slane %v1164_v29, %v2383_v1  ;;  %v1413_v29 = vld [vmem:[%s2536_s8] sm:$0x1] }
 0x30e   :  { %v1177_v53 = vmul.f32 %v1170_v54, %v1131_v17  ;;  %v1178_v31 = vmul.f32 %v1174_v30, %v1132_v19  ;;  %v1201_v55 = vmul.f32 %v1174_v30, %v1096_v39  ;;  %v1199_v32 = vmul.f32 %v1174_v30, %v1092_v34 }
 0x30f   :  { %v1198_v36 = vmul.f32 %v1170_v54, %v2453_v33  ;;  %v1200_v37 = vmul.f32 %v1170_v54, %v1094_v35 }
 0x310   :  { %v1181_v38 = vcombine.low %v1177_v53, %v1178_v31  ;;  %v1417_v53 = vld [vmem:[#allocation11] sm:$0x1] }
 0x312   :  { %v1188_v41 = vrot.slane %v1181_v38, %v2376_v52 }
 0x314   :  { %v1195_v44 = vrot.slane %v1188_v41, %v2376_v52  ;;  %v1967_v52 = vld [vmem:[%s2538_s10] sm:$0xff]  }
 0x316   :  { %v1197_v45 = vsub.f32 %v1165_v43, %v1195_v44 }
 0x318   :  { %v1206_v46 = vrot.slane %v1197_v45, %v2380_v63  ;;  %v1210_v47 = vrot.slane %v1197_v45, %v2383_v1  ;;  %v1968_v1 = vld [vmem:[%s2538_s10 + $0x8] sm:$0xff]  }
 0x31a   :  { %v1216_v48 = vadd.f32 %v1210_v47, %v1201_v55  ;;  %v1214_v49 = vadd.f32 %v1210_v47, %v1199_v32  ;;  %v1213_v50 = vadd.f32 %v1206_v46, %v1198_v36  ;;  %v1215_v51 = vadd.f32 %v1206_v46, %v1200_v37 }
 0x31c   :  { %v1220_v39 = vmax.f32 %v1216_v48, 0.0  ;;  %v1218_v34 = vmax.f32 %v1214_v49, 0.0  ;;  %v1217_v56 = vmax.f32 %v1213_v50, 0.0  ;;  %v1219_v33 = vmax.f32 %v1215_v51, 0.0 }
 0x31e   :  { %v1222_v35 = vpack.c.bf16 %v1220_v39, %v1218_v34  ;;  %v1221_v57 = vpack.c.bf16 %v1219_v33, %v1217_v56 }
 0x320   :  { %1383 = vmatprep.mubr.bf16.mxu1 %v1222_v35 }
 0x321   :  { %1384 = vmatmul.mubr.bf16.vlgmr.msra.gmra.mrb[8].mxu1 %v1221_v57 }
 0x322   :  { %1769 = vmatpush3.bf16.msra.mxu1 %v1967_v52  ;;  %1784 = vmatprep.mubr.msk.bf16.mxu1 %vm2168_vm0, %v2167_v58 }
 0x323   :  { %1770 = vmatprep.subr.bf16.mxu1 %v2167_v58 }
 0x326   :  { %1771 = vmatpush3.bf16.msra.mxu1 %v1968_v1 }
 0x327   :  { %1772 = vmatprep.subr.bf16.mxu1 %v2167_v58 }
 0x32a   :  { %1773 = vmatpush3.bf16.msra.mxu1 %v1969_v60 }
 0x32b   :  { %1774 = vmatprep.subr.bf16.mxu1 %v2167_v58 }
 0x32e   :  { %1775 = vmatpush3.bf16.msra.mxu1 %v1970_v61 }
 0x32f   :  { %1776 = vmatprep.subr.bf16.mxu1 %v2167_v58 }
 0x332   :  { %1777 = vmatpush3.bf16.msra.mxu1 %v1971_v62 }
 0x333   :  { %1778 = vmatprep.subr.bf16.mxu1 %v2167_v58 }
 0x336   :  { %1779 = vmatpush3.bf16.msra.mxu1 %v1972_v0 }
 0x337   :  { %1780 = vmatprep.subr.bf16.mxu1 %v2167_v58 }
 0x33a   :  { %1781 = vmatpush3.bf16.msra.mxu1 %v1973_v2 }
 0x33b   :  { %1782 = vmatprep.subr.bf16.mxu1 %v2167_v58 }
 0x33e   :  { %1783 = vmatpush3.bf16.msra.mxu1 %v1974_v3 }
 0x3f4   :  { %v1753_v4 = vpop.f32.mrb[8].mxu1 }
 0x3f5   :  { %v1754_v6 = vpop.f32.mrb[9].mxu1 }
 0x3f6   :  { %v1755_v9 = vadd.f32 %v1754_v6, %v1753_v4  ;;  %v1756_v12 = vpop.f32.mrb[10].mxu1 }
 0x3f7   :  { %v1757_v13 = vpop.f32.mrb[11].mxu1 }
 0x3f8   :  { %v1758_v10 = vadd.f32 %v1757_v13, %v1756_v12  ;;  %v1399_v14 = vmul.f32 %v1755_v9, %v1755_v9 }
 0x3fa   :  { %v1392_v15 = vadd.f32 %v1758_v10, %v1755_v9  ;;  %v1400_v16 = vmul.f32 %v1758_v10, %v1758_v10 }
 0x3fc   :  { %v1393_v17 = vrot.slane %v1392_v15, 4  ;;  %v1401_v18 = vadd.f32 %v1400_v16, %v1399_v14 }
 0x3fe   :  { %v1394_v19 = vadd.f32 %v1393_v17, %v1392_v15  ;;  %v1402_v20 = vrot.slane %v1401_v18, 4 }
 0x400   :  { %v1395_v21 = vrot.slane %v1394_v19, 2  ;;  %v1403_v22 = vadd.f32 %v1402_v20, %v1401_v18  ;;  %v1570_v18 = vld [vmem:[%s2539_s11] sm:$0x1]  ;;  %s2123_s11 = scalar_lea.vmem %s1603_s25, 256 }
 0x401   :  { %p2124_p6 = scmp.ne.s32.totalorder %s1603_s25, %s2123_s11  ;;  %p2129_p8 = scmp.lt.s32.totalorder %s2123_s11, %s2123_s11 }
 0x402   :  { %v1396_v23 = vadd.f32 %v1395_v21, %v1394_v19  ;;  %v1404_v24 = vrot.slane %v1403_v22, 2  ;;  %v1574_v21 = vld [vmem:[%s2540_s12] sm:$0x1] }
 0x403   :  { %p2130_p9 = por %p2129_p8, %p2128_p7 }
 0x404   :  { %v1397_v40 = vrot.slane %v1396_v23, 1  ;;  %v1405_v42 = vadd.f32 %v1404_v24, %v1403_v22 }
 0x405   :  { %p2131_p10 = pnand %p2130_p9, %p2124_p6 }
 0x406   :  { %v1398_v25 = vadd.f32 %v1397_v40, %v1396_v23  ;;  %v1406_v59 = vrot.slane %v1405_v42, 1 }
 0x408   :  { %v1407_v26 = vadd.f32 %v1406_v59, %v1405_v42  ;;  %v1408_v7 = vmul.f32 0.0625, %v1398_v25 }
 0x40a   :  { %v1409_v11 = vmul.f32 0.0625, %v1407_v26  ;;  %v1410_v27 = vmul.f32 %v1408_v7, %v1408_v7 }
 0x40c   :  { %v1411_v5 = vsub.f32 %v1409_v11, %v1410_v27 }
 0x40e   :  { %v1412_v28 = vmax.f32 %v1411_v5, 0.0 }
 0x410   :  { %v1414_v8 = vadd.f32 1e-05, %v1412_v28 }
 0x412   :  { %1987 = vrsqrt.f32 %v1414_v8 }
 0x41c   :  { %v1988_v54 = vpop.eup %1987 }
 0x41d   :  { %v1416_v30 = vmul.f32 %v1988_v54, %v1413_v29 }
 0x41f   :  { %v1418_v31 = vmul.f32 %v1416_v30, %v1408_v7  ;;  %v1424_v55 = vrot.slane %v1416_v30, %v2380_v63 }
 0x421   :  { %v1419_v32 = vsub.f32 %v1417_v53, %v1418_v31  ;;  %v1426_v36 = vmul.f32 %v1755_v9, %v1424_v55  ;;  %v1427_v37 = vmul.f32 %v1758_v10, %v1424_v55 }
 0x423   :  { %v1432_v38 = vrot.slane %v1419_v32, %v2380_v63 }
 0x425   :  { %v1435_v41 = vadd.f32 %v1432_v38, %v1427_v37  ;;  %v1434_v43 = vadd.f32 %v1432_v38, %v1426_v36 }
 0x427   :  { %v1437_v44 = vmax.f32 %v1435_v41, 0.0  ;;  %v1436_v45 = vmax.f32 %v1434_v43, 0.0 }
 0x429   :  { %v1438_v46 = vpack.c.bf16 %v1437_v44, %v1436_v45 }
 0x42b   :  { %1785 = vmatmul.mubr.bf16.vlgmr.msra.gmra.mrb[12].mxu1 %v1438_v46 }
 0x4fe   :  { %v1537_v47 = vpop.f32.mrb[12].mxu1 }
 0x4ff   :  { %v1554_v48 = vmul.f32 %v1537_v47, %v1537_v47  ;;  %v1786_v49 = vpop.f32.mrb[13].mxu1  ;;  %v1545_v51 = vsel %vm1544_vm1, %v1537_v47, 0.0 }
 0x500   :  { %v1540_v50 = vpop.f32.mrb[14].mxu1 }
 0x501   :  { %v1546_v39 = vsel %vm1544_vm1, %v1540_v50, 0.0  ;;  %v1555_v34 = vmul.f32 %v1540_v50, %v1540_v50  ;;  %v1787_v56 = vpop.f32.mrb[15].mxu1  ;;  %v1556_v35 = vsel %vm1544_vm1, %v1554_v48, 0.0 }
 0x502   :  { %v1547_v33 = vadd.f32 %v1546_v39, %v1545_v51 }
 0x503   :  { %v1557_v57 = vsel %vm1544_vm1, %v1555_v34, 0.0 }
 0x504   :  { %v1548_v52 = vrot.slane %v1547_v33, 4  ;;  %v1558_v58 = vadd.f32 %v1557_v57, %v1556_v35 }
 0x506   :  { %v1549_v1 = vadd.f32 %v1548_v52, %v1547_v33  ;;  %v1559_v60 = vrot.slane %v1558_v58, 4 }
 0x508   :  { %v1550_v61 = vrot.slane %v1549_v1, 2  ;;  %v1560_v62 = vadd.f32 %v1559_v60, %v1558_v58 }
 0x50a   :  { %v1551_v0 = vadd.f32 %v1550_v61, %v1549_v1  ;;  %v1561_v2 = vrot.slane %v1560_v62, 2 }
 0x50c   :  { %v1552_v3 = vrot.slane %v1551_v0, 1  ;;  %v1562_v4 = vadd.f32 %v1561_v2, %v1560_v62 }
 0x50e   :  { %v1553_v6 = vadd.f32 %v1552_v3, %v1551_v0  ;;  %v1563_v9 = vrot.slane %v1562_v4, 1 }
 0x510   :  { %v1564_v12 = vadd.f32 %v1563_v9, %v1562_v4  ;;  %v1565_v13 = vmul.f32 0.0625, %v1553_v6 }
 0x512   :  { %v1566_v10 = vmul.f32 0.0625, %v1564_v12  ;;  %v1567_v14 = vmul.f32 %v1565_v13, %v1565_v13 }
 0x514   :  { %v1568_v15 = vsub.f32 %v1566_v10, %v1567_v14 }
 0x516   :  { %v1569_v16 = vmax.f32 %v1568_v15, 0.0 }
 0x518   :  { %v1571_v17 = vadd.f32 1e-05, %v1569_v16 }
 0x51a   :  { %1989 = vrsqrt.f32 %v1571_v17 }
 0x524   :  { %v1990_v19 = vpop.eup %1989 }
 0x525   :  { %v1573_v20 = vmul.f32 %v1990_v19, %v1570_v18 }
 0x527   :  { %v1575_v22 = vmul.f32 %v1573_v20, %v1565_v13  ;;  %v1581_v23 = vrot.slane %v1573_v20, %v2380_v63 }
 0x529   :  { %v1576_v24 = vsub.f32 %v1574_v21, %v1575_v22  ;;  %v1583_v40 = vmul.f32 %v1581_v23, %v1537_v47  ;;  %v1584_v42 = vmul.f32 %v1581_v23, %v1540_v50 }
 0x52b   :  { %v1589_v25 = vrot.slane %v1576_v24, %v2380_v63 }
 0x52d   :  { %v1592_v59 = vadd.f32 %v1589_v25, %v1584_v42  ;;  %v1591_v26 = vadd.f32 %v1589_v25, %v1583_v40 }
 0x52f   :  { %v1594_v7 = vmax.f32 %v1592_v59, 0.0  ;;  %v1593_v11 = vmax.f32 %v1591_v26, 0.0 }
 0x531   :  { %1596 = vst.msk [vmem:[#allocation13 + $0x8] sm:$0xff] %vm1544_vm1, %v1594_v7  ;;  %1595 = vst.msk [vmem:[#allocation13] sm:$0xff] %vm1544_vm1, %v1593_v11 }
 0x532   :  { %2134 = shalt.err (!%p2131_p10)
}
 0x533   :  { %s2135_s1 = scalar_lea.hbm %s2541_s13, 256 }
 0x534   :  { %p2136_p11 = scmp.ne.s32.totalorder %s2541_s13, %s2135_s1  ;;  %p2139_p12 = scmp.lt.u32.totalorder %s2135_s1, %s2541_s13 }
 0x536   :  { %p2141_p13 = pnand %p2139_p12, %p2136_p11 }
 0x538   :  { %2144 = shalt.err (!%p2141_p13)
}
 0x539   :  { %1608 = dma.vmem_to_hbm [thread:$0]  %s1603_s25, 256, %s2541_s13, [#allocation4], %s2157_s2, %s2157_s2, %s2158_s26  }
 0x53a   :  { %2153 = dma.done.wait [#allocation4], 256  }
 0x53b   :  { %2154 = vsyncadd [#allocation4], 4294967040 }
 0x53c   :  { %1612 = vsyncpa [#allocation3], 1 }
 0x53d   :  { %1613 = vsyncpa [#allocation6], 1 }
 0x53e   :  { %1614 = vsyncpa [#allocation9], 1 }
 0x53f   :  { %1615 = vsyncpa [#allocation12], 1 }
 0x540   :  { %1616 = vsyncpa [#allocation4], 1 }

</bundles_post_ra>
